<compile_context>
chip_gen: v7x
topology: tpu7x:2x2x1
jax: 0.10.0
libtpu: 0.0.40
codegen_flags: <defaults>
</compile_context>

<pallas_src>
import jax
import jax.numpy as jnp
from jax.experimental import pallas as pl
from jax.experimental.pallas import tpu as pltpu

PAD = 128                      # lane width every fused layer is padded to
NUM_MATMUL_LAYERS = 5          # 3 fused tower layers + 2 regression-head hidden
# ReLU after tower hidden (0,1), none after the embedding layer (2),
# ReLU after both head hidden layers (3,4).  Final Linear(->1) is the reduce.
RELU_AFTER = (True, True, False, True, True)


def _round_up(x, m):
    return (x + m - 1) // m * m


def _make_kernel(du, di, doff):
    """Kernel closure over the (static) raw feature widths / item row offset."""

    def kernel(u_ref, v_ref, w_ref, b_ref, out_ref):
        wdt = w_ref.dtype                       # bf16 (prod) or f32 (validation)
        b_all = b_ref[...]                      # [8, 128] f32 bias/aux slab

        # --- layer 0: fused user/item input layer as two narrow-K matmuls ---
        h = (jnp.dot(u_ref[...].astype(wdt), w_ref[0, :du, :],
                     preferred_element_type=jnp.float32)
             + jnp.dot(v_ref[...].astype(wdt), w_ref[0, doff:doff + di, :],
                       preferred_element_type=jnp.float32)
             + b_all[0:1, :])
        h = jnp.maximum(h, 0.0)

        # --- layers 1..4: uniform [tile_b,128] @ [128,128] MXU passes ---
        for l in range(1, NUM_MATMUL_LAYERS):   # static unroll (tiny)
            h = jnp.dot(h.astype(wdt), w_ref[l],
                        preferred_element_type=jnp.float32) + b_all[l:l + 1, :]
            if RELU_AFTER[l]:
                h = jnp.maximum(h, 0.0)

        # --- final Linear(r2 -> 1) as f32 multiply + lane reduce ---
        # b_all[6] holds W5^T as a row (zeros beyond r2), b_all[5,0] the bias.
        rating = (jnp.sum(h * b_all[6:7, :], axis=1, keepdims=True)
                  + b_all[5:6, 0:1])
        out_ref[...] = rating                   # narrow [tile_b, 1] store

    return kernel


def _choose_tiling(B, max_tile_b=512):
    """Pick (tile_b, b_pad): big tiles for throughput, no gross over-padding,
    and >=2 tiles for large batches so v7x's second TensorCore gets work."""
    b_min = _round_up(B, 8)
    tile_b = min(max_tile_b, b_min)
    if tile_b == b_min and b_min > 256:
        tile_b = _round_up((b_min + 1) // 2, 8)
    b_pad = _round_up(B, tile_b)
    return tile_b, b_pad


def dmf_regression_forward(user_features, item_features, w_slab, b_slab,
                           *, max_tile_b=512):
    """Pallas forward.  Returns predicted rating, shape [B] (== .squeeze(-1))."""
    B, du = user_features.shape
    di = item_features.shape[1]
    doff = _round_up(du, 8)                     # item rows' sublane-aligned offset
    assert doff + di <= PAD

    tile_b, b_pad = _choose_tiling(B, max_tile_b)
    u = user_features.astype(jnp.float32)
    v = item_features.astype(jnp.float32)
    if b_pad != B:                              # pad batch rows only (cheap)
        u = jnp.pad(u, ((0, b_pad - B), (0, 0)))
        v = jnp.pad(v, ((0, b_pad - B), (0, 0)))

    grid = (b_pad // tile_b,)
    w_itemsize = jnp.dtype(w_slab.dtype).itemsize
    cost = pl.CostEstimate(
        flops=2 * b_pad * PAD * (du + di + (NUM_MATMUL_LAYERS - 1) * PAD + 1),
        transcendentals=0,
        bytes_accessed=(b_pad * (du + di) * 4 + w_slab.size * w_itemsize
                        + b_slab.size * 4 + b_pad * 4))

    out = pl.pallas_call(
        _make_kernel(du, di, doff),
        out_shape=jax.ShapeDtypeStruct((b_pad, 1), jnp.float32),
        grid=grid,
        in_specs=[
            pl.BlockSpec((tile_b, du), lambda i: (i, 0)),      # raw user feats
            pl.BlockSpec((tile_b, di), lambda i: (i, 0)),      # raw item feats
            pl.BlockSpec(w_slab.shape, lambda i: (0, 0, 0)),   # resident weights
            pl.BlockSpec(b_slab.shape, lambda i: (0, 0)),      # resident bias/aux
        ],
        out_specs=pl.BlockSpec((tile_b, 1), lambda i: (i, 0)), # narrow ratings
        compiler_params=pltpu.CompilerParams(
            dimension_semantics=("parallel",)),
        cost_estimate=cost,
    )(u, v, w_slab, b_slab)
    return out[:B, 0]


def pack_params(p, num_user_inputs, num_item_inputs, hidden_dim1, hidden_dim2,
                embedding_dim, reg_hidden1, reg_hidden2,
                compute_dtype=jnp.bfloat16):
    """Pack all 9 Linear layers into a [5,128,128] weight slab (compute_dtype)
    plus an [8,128] f32 bias/aux slab.

    Layers 0-2 are block-diagonal fusions of (user_net[k], item_net[k]); the
    layer-2 output is exactly cat(u_embed, v_embed).  Layers 3-4 are the head
    hidden layers.  The final Linear(r2->1) lives in the f32 bias slab: row 6
    holds its weight transposed as a row, row 5 col 0 its bias.  All padding
    entries are zero, keeping the padded chain numerically identical to the
    unfused model (up to compute_dtype rounding)."""
    du, di = num_user_inputs, num_item_inputs
    h1, h2, e = hidden_dim1, hidden_dim2, embedding_dim
    r1, r2 = reg_hidden1, reg_hidden2
    doff = _round_up(du, 8)
    assert max(doff + di, 2 * h1, 2 * h2, 2 * e, r1, r2) <= PAD

    w = jnp.zeros((NUM_MATMUL_LAYERS, PAD, PAD), jnp.float32)
    b = jnp.zeros((8, PAD), jnp.float32)

    # layer 0: [du | di] -> [2*h1]   (user rows at 0, item rows at doff)
    w = w.at[0, :du, :h1].set(p["uw1"])
    w = w.at[0, doff:doff + di, h1:2 * h1].set(p["iw1"])
    b = b.at[0, :h1].set(p["ub1"])
    b = b.at[0, h1:2 * h1].set(p["ib1"])
    # layer 1: [2*h1] -> [2*h2]
    w = w.at[1, :h1, :h2].set(p["uw2"])
    w = w.at[1, h1:2 * h1, h2:2 * h2].set(p["iw2"])
    b = b.at[1, :h2].set(p["ub2"])
    b = b.at[1, h2:2 * h2].set(p["ib2"])
    # layer 2: [2*h2] -> [2*e] == cat(u_embed, v_embed)
    w = w.at[2, :h2, :e].set(p["uw3"])
    w = w.at[2, h2:2 * h2, e:2 * e].set(p["iw3"])
    b = b.at[2, :e].set(p["ub3"])
    b = b.at[2, e:2 * e].set(p["ib3"])
    # layers 3-4: regression-head hidden layers
    w = w.at[3, :2 * e, :r1].set(p["rw1"])
    b = b.at[3, :r1].set(p["rb1"])
    w = w.at[4, :r1, :r2].set(p["rw2"])
    b = b.at[4, :r2].set(p["rb2"])
    # final Linear(r2 -> 1): stays f32 in the bias slab
    b = b.at[6, :r2].set(p["rw3"][:, 0])
    b = b.at[5, 0].set(p["rb3"][0])
    return w.astype(compute_dtype), b


def init_params(key, num_user_inputs, num_item_inputs, hidden_dim1, hidden_dim2,
                embedding_dim, reg_hidden1, reg_hidden2):
    """nn.Linear-style init.  Weights stored [in, out], biases [out]."""
    specs = {
        "uw1": (num_user_inputs, hidden_dim1),
        "uw2": (hidden_dim1, hidden_dim2),
        "uw3": (hidden_dim2, embedding_dim),
        "iw1": (num_item_inputs, hidden_dim1),
        "iw2": (hidden_dim1, hidden_dim2),
        "iw3": (hidden_dim2, embedding_dim),
        "rw1": (2 * embedding_dim, reg_hidden1),
        "rw2": (reg_hidden1, reg_hidden2),
        "rw3": (reg_hidden2, 1),
    }
    params = {}
    keys = jax.random.split(key, 2 * len(specs))
    for idx, (name, (d_in, d_out)) in enumerate(specs.items()):
        bound = 1.0 / (float(d_in) ** 0.5)
        params[name] = jax.random.uniform(
            keys[2 * idx], (d_in, d_out), jnp.float32, -bound, bound)
        params[name.replace("w", "b")] = jax.random.uniform(
            keys[2 * idx + 1], (d_out,), jnp.float32, -bound, bound)
    return params


def dmf_regression_reference(user_features, item_features, p):
    """Pure-JAX unfused reference matching the PyTorch forward."""
    u = jnp.maximum(user_features @ p["uw1"] + p["ub1"], 0.0)
    u = jnp.maximum(u @ p["uw2"] + p["ub2"], 0.0)
    u = u @ p["uw3"] + p["ub3"]
    v = jnp.maximum(item_features @ p["iw1"] + p["ib1"], 0.0)
    v = jnp.maximum(v @ p["iw2"] + p["ib2"], 0.0)
    v = v @ p["iw3"] + p["ib3"]
    c = jnp.concatenate([u, v], axis=-1)
    r = jnp.maximum(c @ p["rw1"] + p["rb1"], 0.0)
    r = jnp.maximum(r @ p["rw2"] + p["rb2"], 0.0)
    r = r @ p["rw3"] + p["rb3"]
    return r[:, 0]


if __name__ == "__main__":
    num_user_inputs, num_item_inputs = 16, 24
    hidden_dim1, hidden_dim2, embedding_dim = 32, 32, 16
    reg_hidden1, reg_hidden2 = 32, 16

    key = jax.random.PRNGKey(0)
    k_params, k_u, k_i, k_u2, k_i2 = jax.random.split(key, 5)
    params = init_params(k_params, num_user_inputs, num_item_inputs,
                         hidden_dim1, hidden_dim2, embedding_dim,
                         reg_hidden1, reg_hidden2)

    B = 8
    user_features = jax.random.normal(k_u, (B, num_user_inputs), jnp.float32)
    item_features = jax.random.normal(k_i, (B, num_item_inputs), jnp.float32)
    ref = dmf_regression_reference(user_features, item_features, params)

    # 1) f32 pack: tight structural check against the unfused reference.
    w32, b32 = pack_params(params, num_user_inputs, num_item_inputs,
                           hidden_dim1, hidden_dim2, embedding_dim,
                           reg_hidden1, reg_hidden2,
                           compute_dtype=jnp.float32)
    r32 = jax.block_until_ready(
        dmf_regression_forward(user_features, item_features, w32, b32))
    assert r32.shape == (B,)
    assert jnp.allclose(r32, ref, atol=1e-4, rtol=1e-4), (r32, ref)

    # 2) bf16 pack (production MXU path), looser tolerance per bf16 rounding.
    wbf, bbf = pack_params(params, num_user_inputs, num_item_inputs,
                           hidden_dim1, hidden_dim2, embedding_dim,
                           reg_hidden1, reg_hidden2,
                           compute_dtype=jnp.bfloat16)
    rbf = jax.block_until_ready(
        dmf_regression_forward(user_features, item_features, wbf, bbf))
    assert rbf.shape == (B,)
    assert jnp.allclose(rbf, ref, atol=2e-2, rtol=2e-2), (rbf, ref)

    # 3) Multi-tile grid + padded-batch path (exercises tiling / megacore split).
    B2 = 300
    u2 = jax.random.normal(k_u2, (B2, num_user_inputs), jnp.float32)
    i2 = jax.random.normal(k_i2, (B2, num_item_inputs), jnp.float32)
    ref2 = dmf_regression_reference(u2, i2, params)
    r2 = jax.block_until_ready(dmf_regression_forward(u2, i2, wbf, bbf))
    assert r2.shape == (B2,)
    assert jnp.allclose(r2, ref2, atol=2e-2, rtol=2e-2), (r2, ref2)

    print("KERNEL_OK")
</pallas_src>

<mosaic_0001>
module attributes {stable_mosaic.version = 11 : i64} {
  func.func @kernel(%arg0: i32, %arg1: memref<8x16xf32, #tpu.memory_space<vmem>>, %arg2: memref<8x24xf32, #tpu.memory_space<vmem>>, %arg3: memref<5x128x128xf32, #tpu.memory_space<vmem>>, %arg4: memref<8x128xf32, #tpu.memory_space<vmem>>, %arg5: memref<8x1xf32, #tpu.memory_space<vmem>>) attributes {dimension_semantics = [#tpu.dimension_semantics<parallel>], iteration_bounds = array<i64: 1>, scalar_prefetch = 0 : i64, scratch_operands = 0 : i64, tpu.core_type = #tpu.core_type<tc>, window_params = [{transform_indices = @transform_0, window_bounds = array<i64: 8, 16>}, {transform_indices = @transform_1, window_bounds = array<i64: 8, 24>}, {pipeline_mode = #tpu.pipeline_mode<synchronous>, transform_indices = @transform_2, window_bounds = array<i64: 5, 128, 128>}, {pipeline_mode = #tpu.pipeline_mode<synchronous>, transform_indices = @transform_3, window_bounds = array<i64: 8, 128>}, {transform_indices = @transform_4, window_bounds = array<i64: 8, 1>}]} {
    %c0 = arith.constant 0 : index
    %c0_0 = arith.constant 0 : index
    %0 = vector.load %arg4[%c0, %c0_0] : memref<8x128xf32, #tpu.memory_space<vmem>>, vector<8x128xf32>
    %c0_1 = arith.constant 0 : index
    %c0_2 = arith.constant 0 : index
    %1 = vector.load %arg1[%c0_1, %c0_2] : memref<8x16xf32, #tpu.memory_space<vmem>>, vector<8x16xf32>
    %c0_3 = arith.constant 0 : index
    %c0_4 = arith.constant 0 : index
    %c0_5 = arith.constant 0 : index
    %2 = vector.load %arg3[%c0_3, %c0_4, %c0_5] : memref<5x128x128xf32, #tpu.memory_space<vmem>>, vector<1x16x128xf32>
    %3 = vector.shape_cast %2 : vector<1x16x128xf32> to vector<16x128xf32>
    %cst = arith.constant dense<0.000000e+00> : vector<8x128xf32>
    %4 = tpu.matmul %1, %3, %cst {dimension_numbers = #tpu.dot_dimension_numbers<[1], [0], [0], [1], [0, 0, 1, 1], [], []>} : vector<8x16xf32>, vector<16x128xf32>, vector<8x128xf32> -> vector<8x128xf32>
    %c0_6 = arith.constant 0 : index
    %c0_7 = arith.constant 0 : index
    %5 = vector.load %arg2[%c0_6, %c0_7] : memref<8x24xf32, #tpu.memory_space<vmem>>, vector<8x24xf32>
    %c0_8 = arith.constant 0 : index
    %c16 = arith.constant 16 : index
    %c0_9 = arith.constant 0 : index
    %6 = vector.load %arg3[%c0_8, %c16, %c0_9] : memref<5x128x128xf32, #tpu.memory_space<vmem>>, vector<1x24x128xf32>
    %7 = vector.shape_cast %6 : vector<1x24x128xf32> to vector<24x128xf32>
    %cst_10 = arith.constant dense<0.000000e+00> : vector<8x128xf32>
    %8 = tpu.matmul %5, %7, %cst_10 {dimension_numbers = #tpu.dot_dimension_numbers<[1], [0], [0], [1], [0, 0, 1, 1], [], []>} : vector<8x24xf32>, vector<24x128xf32>, vector<8x128xf32> -> vector<8x128xf32>
    %9 = arith.addf %4, %8 : vector<8x128xf32>
    %10 = vector.extract_strided_slice %0 {offsets = [0, 0], sizes = [1, 128], strides = [1, 1]} : vector<8x128xf32> to vector<1x128xf32>
    %11 = vector.broadcast %10 : vector<1x128xf32> to vector<8x128xf32>
    %12 = arith.addf %9, %11 : vector<8x128xf32>
    %cst_11 = arith.constant 0.000000e+00 : f32
    %13 = vector.broadcast %cst_11 : f32 to vector<8x128xf32>
    %14 = arith.maximumf %12, %13 : vector<8x128xf32>
    %c1 = arith.constant 1 : index
    %c0_12 = arith.constant 0 : index
    %c0_13 = arith.constant 0 : index
    %15 = vector.load %arg3[%c1, %c0_12, %c0_13] : memref<5x128x128xf32, #tpu.memory_space<vmem>>, vector<1x128x128xf32>
    %16 = vector.shape_cast %15 : vector<1x128x128xf32> to vector<128x128xf32>
    %cst_14 = arith.constant dense<0.000000e+00> : vector<8x128xf32>
    %17 = tpu.matmul %14, %16, %cst_14 {dimension_numbers = #tpu.dot_dimension_numbers<[1], [0], [0], [1], [0, 0, 1, 1], [], []>} : vector<8x128xf32>, vector<128x128xf32>, vector<8x128xf32> -> vector<8x128xf32>
    %18 = vector.extract_strided_slice %0 {offsets = [1, 0], sizes = [1, 128], strides = [1, 1]} : vector<8x128xf32> to vector<1x128xf32>
    %19 = vector.broadcast %18 : vector<1x128xf32> to vector<8x128xf32>
    %20 = arith.addf %17, %19 : vector<8x128xf32>
    %cst_15 = arith.constant 0.000000e+00 : f32
    %21 = vector.broadcast %cst_15 : f32 to vector<8x128xf32>
    %22 = arith.maximumf %20, %21 : vector<8x128xf32>
    %c2 = arith.constant 2 : index
    %c0_16 = arith.constant 0 : index
    %c0_17 = arith.constant 0 : index
    %23 = vector.load %arg3[%c2, %c0_16, %c0_17] : memref<5x128x128xf32, #tpu.memory_space<vmem>>, vector<1x128x128xf32>
    %24 = vector.shape_cast %23 : vector<1x128x128xf32> to vector<128x128xf32>
    %cst_18 = arith.constant dense<0.000000e+00> : vector<8x128xf32>
    %25 = tpu.matmul %22, %24, %cst_18 {dimension_numbers = #tpu.dot_dimension_numbers<[1], [0], [0], [1], [0, 0, 1, 1], [], []>} : vector<8x128xf32>, vector<128x128xf32>, vector<8x128xf32> -> vector<8x128xf32>
    %26 = vector.extract_strided_slice %0 {offsets = [2, 0], sizes = [1, 128], strides = [1, 1]} : vector<8x128xf32> to vector<1x128xf32>
    %27 = vector.broadcast %26 : vector<1x128xf32> to vector<8x128xf32>
    %28 = arith.addf %25, %27 : vector<8x128xf32>
    %c3 = arith.constant 3 : index
    %c0_19 = arith.constant 0 : index
    %c0_20 = arith.constant 0 : index
    %29 = vector.load %arg3[%c3, %c0_19, %c0_20] : memref<5x128x128xf32, #tpu.memory_space<vmem>>, vector<1x128x128xf32>
    %30 = vector.shape_cast %29 : vector<1x128x128xf32> to vector<128x128xf32>
    %cst_21 = arith.constant dense<0.000000e+00> : vector<8x128xf32>
    %31 = tpu.matmul %28, %30, %cst_21 {dimension_numbers = #tpu.dot_dimension_numbers<[1], [0], [0], [1], [0, 0, 1, 1], [], []>} : vector<8x128xf32>, vector<128x128xf32>, vector<8x128xf32> -> vector<8x128xf32>
    %32 = vector.extract_strided_slice %0 {offsets = [3, 0], sizes = [1, 128], strides = [1, 1]} : vector<8x128xf32> to vector<1x128xf32>
    %33 = vector.broadcast %32 : vector<1x128xf32> to vector<8x128xf32>
    %34 = arith.addf %31, %33 : vector<8x128xf32>
    %cst_22 = arith.constant 0.000000e+00 : f32
    %35 = vector.broadcast %cst_22 : f32 to vector<8x128xf32>
    %36 = arith.maximumf %34, %35 : vector<8x128xf32>
    %c4 = arith.constant 4 : index
    %c0_23 = arith.constant 0 : index
    %c0_24 = arith.constant 0 : index
    %37 = vector.load %arg3[%c4, %c0_23, %c0_24] : memref<5x128x128xf32, #tpu.memory_space<vmem>>, vector<1x128x128xf32>
    %38 = vector.shape_cast %37 : vector<1x128x128xf32> to vector<128x128xf32>
    %cst_25 = arith.constant dense<0.000000e+00> : vector<8x128xf32>
    %39 = tpu.matmul %36, %38, %cst_25 {dimension_numbers = #tpu.dot_dimension_numbers<[1], [0], [0], [1], [0, 0, 1, 1], [], []>} : vector<8x128xf32>, vector<128x128xf32>, vector<8x128xf32> -> vector<8x128xf32>
    %40 = vector.extract_strided_slice %0 {offsets = [4, 0], sizes = [1, 128], strides = [1, 1]} : vector<8x128xf32> to vector<1x128xf32>
    %41 = vector.broadcast %40 : vector<1x128xf32> to vector<8x128xf32>
    %42 = arith.addf %39, %41 : vector<8x128xf32>
    %cst_26 = arith.constant 0.000000e+00 : f32
    %43 = vector.broadcast %cst_26 : f32 to vector<8x128xf32>
    %44 = arith.maximumf %42, %43 : vector<8x128xf32>
    %45 = vector.extract_strided_slice %0 {offsets = [6, 0], sizes = [1, 128], strides = [1, 1]} : vector<8x128xf32> to vector<1x128xf32>
    %46 = vector.broadcast %45 : vector<1x128xf32> to vector<8x128xf32>
    %47 = arith.mulf %44, %46 : vector<8x128xf32>
    %cst_27 = arith.constant dense<0.000000e+00> : vector<8xf32>
    %48 = vector.multi_reduction <add>, %47, %cst_27 [1] : vector<8x128xf32> to vector<8xf32>
    %49 = vector.shape_cast %48 : vector<8xf32> to vector<8x1xf32>
    %50 = vector.extract_strided_slice %0 {offsets = [5, 0], sizes = [1, 1], strides = [1, 1]} : vector<8x128xf32> to vector<1x1xf32>
    %51 = vector.broadcast %50 : vector<1x1xf32> to vector<8x1xf32>
    %52 = arith.addf %49, %51 : vector<8x1xf32>
    %c0_28 = arith.constant 0 : index
    %c0_29 = arith.constant 0 : index
    %53 = vector.load %arg5[%c0_28, %c0_29] : memref<8x1xf32, #tpu.memory_space<vmem>>, vector<8x1xf32>
    tpu.vector_store %arg5[%c0_28, %c0_29], %52 {strides = array<i32>} : memref<8x1xf32, #tpu.memory_space<vmem>>, vector<8x1xf32>,
    return
  }
  func.func @transform_0(%arg0: i32) -> (i32, i32) {
    %c0_i32 = arith.constant 0 : i32
    %c0_i32_0 = arith.constant 0 : i32
    return %arg0, %c0_i32 : i32, i32
  }
  func.func @transform_1(%arg0: i32) -> (i32, i32) {
    %c0_i32 = arith.constant 0 : i32
    %c0_i32_0 = arith.constant 0 : i32
    return %arg0, %c0_i32 : i32, i32
  }
  func.func @transform_2(%arg0: i32) -> (i32, i32, i32) {
    %c0_i32 = arith.constant 0 : i32
    %c0_i32_0 = arith.constant 0 : i32
    %c0_i32_1 = arith.constant 0 : i32
    %c0_i32_2 = arith.constant 0 : i32
    return %c0_i32, %c0_i32_0, %c0_i32_1 : i32, i32, i32
  }
  func.func @transform_3(%arg0: i32) -> (i32, i32) {
    %c0_i32 = arith.constant 0 : i32
    %c0_i32_0 = arith.constant 0 : i32
    %c0_i32_1 = arith.constant 0 : i32
    return %c0_i32, %c0_i32_0 : i32, i32
  }
  func.func @transform_4(%arg0: i32) -> (i32, i32) {
    %c0_i32 = arith.constant 0 : i32
    %c0_i32_0 = arith.constant 0 : i32
    return %arg0, %c0_i32 : i32, i32
  }
}

</mosaic_0001>

<bundles_post_ra>
// kernel: tpu_custom_call.1
= control target key start
LH: loop header
LB: loop body
LE: loop exit
PB: predicated region body
PF: predicated region fallthrough
CT: control target
= control target key end

     0   :  { %9 = vsyncpa [#allocation3], 0  ;;  %s1156_s0 = inlined_call_operand.hbm [shape: f32[8,16], index: 0, kind: input, shape index: {}]   ;;  %s1157_s1 = inlined_call_operand.hbm [shape: f32[8,24], index: 1, kind: input, shape index: {}]   ;;  %s1158_s2 = inlined_call_operand.hbm [shape: f32[5,128,128], index: 2, kind: input, shape index: {}]   ;;  %s1159_s3 = inlined_call_operand.vmem [shape: f32[8,128], index: 3, kind: input, shape index: {}]   ;;  %s1160_s4 = inlined_call_operand.vmem [shape: f32[8,1], index: 4, kind: output, shape index: {}]  }
   0x1   :  { %10 = vsyncpa [#allocation5], 0  ;;  %s1016_s15 = smov [#allocation4]   ;;  %s1017_s17 = smov [#allocation2]  }
   0x2   :  { %s27_s16 = sshll.u32 %s1016_s15, 4  ;;  %s17_s18 = sshll.u32 %s1017_s17, 4  ;;  %s28_s16 = int_to_ptr.vmem [resolvable:$true] %s27_s16  ;;  %s18_s18 = int_to_ptr.vmem [resolvable:$true] %s17_s18 }
   0x3   :  { %s946_s21 = scalar_lea.hbm %s1157_s1, 128 }
   0x4   :  { %p947_p0 = scmp.ne.s32.totalorder %s1157_s1, %s946_s21  ;;  %p950_p1 = scmp.lt.u32.totalorder %s946_s21, %s1157_s1 }
   0x6   :  { %p952_p2 = pnand %p950_p1, %p947_p0 }
   0x8   :  { %955 = shalt.err (!%p952_p2)
}
   0x9   :  { %s956_s26 = scalar_lea.vmem %s28_s16, 128  ;;  %p961_p4 = scmp.lt.s32.totalorder %s28_s16, %s28_s16 }
   0xa   :  { %p957_p3 = scmp.ne.s32.totalorder %s28_s16, %s956_s26  ;;  %p962_p5 = scmp.lt.s32.totalorder %s956_s26, %s956_s26 }
   0xc   :  { %p963_p6 = por %p962_p5, %p961_p4 }
   0xe   :  { %p964_p7 = pnand %p963_p6, %p957_p3 }
  0x10   :  { %967 = shalt.err (!%p964_p7)
}
  0x11   :  { %30 = dma.hbm_to_vmem [thread:$0]  %s1157_s1, 128, %s28_s16, [#allocation5]  }
  0x12   :  { %s968_s5 = scalar_lea.hbm %s1156_s0, 128 }
  0x13   :  { %p969_p8 = scmp.ne.s32.totalorder %s1156_s0, %s968_s5  ;;  %p972_p9 = scmp.lt.u32.totalorder %s968_s5, %s1156_s0 }
  0x15   :  { %p974_p10 = pnand %p972_p9, %p969_p8 }
  0x17   :  { %977 = shalt.err (!%p974_p10)
}
  0x18   :  { %s978_s10 = scalar_lea.vmem %s18_s18, 128  ;;  %p983_p12 = scmp.lt.s32.totalorder %s18_s18, %s18_s18 }
  0x19   :  { %p979_p11 = scmp.ne.s32.totalorder %s18_s18, %s978_s10  ;;  %p984_p13 = scmp.lt.s32.totalorder %s978_s10, %s978_s10 }
  0x1b   :  { %p985_p0 = por %p984_p13, %p983_p12 }
  0x1d   :  { %p986_p1 = pnand %p985_p0, %p979_p11 }
  0x1f   :  { %989 = shalt.err (!%p986_p1)
}
  0x20   :  { %20 = dma.hbm_to_vmem [thread:$0]  %s1156_s0, 128, %s18_s18, [#allocation3]  }
  0x21   :  { %s1018_s12 = smov [#allocation6]   ;;  %s990_s16 = scalar_lea.hbm %s1158_s2, 10240 }
  0x22   :  { %s36_s13 = sshll.u32 %s1018_s12, 4  ;;  %p991_p2 = scmp.ne.s32.totalorder %s1158_s2, %s990_s16  ;;  %s37_s13 = int_to_ptr.vmem [resolvable:$true] %s36_s13 }
  0x23   :  { %p994_p3 = scmp.lt.u32.totalorder %s990_s16, %s1158_s2 }
  0x25   :  { %p996_p4 = pnand %p994_p3, %p991_p2 }
  0x27   :  { %999 = shalt.err (!%p996_p4)
}
  0x28   :  { %s1000_s22 = scalar_lea.vmem %s37_s13, 10240  ;;  %p1005_p6 = scmp.lt.s32.totalorder %s37_s13, %s37_s13 }
  0x29   :  { %p1001_p5 = scmp.ne.s32.totalorder %s37_s13, %s1000_s22  ;;  %p1006_p7 = scmp.lt.s32.totalorder %s1000_s22, %s1000_s22 }
  0x2b   :  { %p1007_p8 = por %p1006_p7, %p1005_p6 }
  0x2d   :  { %p1008_p9 = pnand %p1007_p8, %p1001_p5 }
  0x2f   :  { %1011 = shalt.err (!%p1008_p9)
}
  0x30   :  { %s1019_s0 = smov 128   ;;  %s1020_s18 = smov 8  }
  0x31   :  { %42 = dma.hbm_to_vmem [thread:$0]  %s1158_s2, 10240, %s37_s13, [#allocation5], %s1019_s0, %s1019_s0, %s1020_s18  }
  0x32   :  { %1012 = dma.done.wait [#allocation3], 128  }
  0x33   :  { %1013 = vsyncadd [#allocation3], 4294967168 }
  0x34   :  { %1014 = dma.done.wait [#allocation5], 10368  }
  0x35   :  { %1015 = vsyncadd [#allocation5], 4294956928  ;;  %v1021_v0 = vmov 0.0|0.0   ;;  %vm1022_vm0 = vmmov 0   ;;  %v1023_v1 = vmov 0.0   ;;  %v59_v2 = vld [vmem:[#allocation6 + $0x10] sm:$0xff]  ;;  %v210_v56 = vlaneseq }
  0x36   :  { %836 = vmatprep.subr.bf16.mxu0 %v1021_v0  ;;  %839 = vmatprep.subr.bf16.mxu1 %v1021_v0  ;;  %v60_v3 = vld [vmem:[#allocation6 + $0x18] sm:$0xff]  ;;  %v56_v4 = vld [vmem:[#allocation6] sm:$0xff]  ;;  %v57_v6 = vld [vmem:[#allocation6 + $0x8] sm:$0xff]  ;;  %vm136_vm1 = vcmask 130048   ;;  %vm62_vm2 = vcmask 195584   ;;  %vm595_vm3 = vcmask 7168  }
  0x37   :  { %693 = vmatprep.mubr.msk.f32.mxu1 %vm1022_vm0, %v1023_v1  ;;  %686 = vmatprep.mubr.msk.f32.mxu0 %vm1022_vm0, %v1023_v1  ;;  %v837_v5 = vpack.c.bf16 %v60_v3, %v59_v2  ;;  %v840_v7 = vpack.c.bf16 %v57_v6, %v56_v4  ;;  %v217_v8 = vld [vmem:[#allocation6 + $0x80] sm:$0xff]  ;;  %v218_v9 = vld [vmem:[#allocation6 + $0x88] sm:$0xff]  ;;  %v55_v11 = vld [vmem:[#allocation2] sm:$0xff]  ;;  %v1113_v57 = vshrl.u32 %v210_v56, 7 }
  0x38   :  { %v61_v10 = vld [vmem:[#allocation6 + $0x20] sm:$0xff]  ;;  %v843_v12 = vpack.c.bf16 %v218_v9, %v217_v8  ;;  %v58_v13 = vld [vmem:[#allocation4] sm:$0xff]  ;;  %v219_v14 = vld [vmem:[#allocation6 + $0x90] sm:$0xff] }
  0x39   :  { %838 = vmatpush3.bf16.msra.mxu0 %v837_v5  ;;  %841 = vmatpush3.bf16.msra.mxu1 %v840_v7  ;;  %v220_v15 = vld [vmem:[#allocation6 + $0x98] sm:$0xff]  ;;  %v221_v17 = vld [vmem:[#allocation6 + $0xa0] sm:$0xff]  ;;  %v222_v18 = vld [vmem:[#allocation6 + $0xa8] sm:$0xff]  ;;  %v212_v58 = vsub.s32 0, %v1113_v57 }
  0x3a   :  { %684 = vmatprep.subr.mxu0 %v1023_v1  ;;  %842 = vmatprep.subr.bf16.mxu1 %v1021_v0  ;;  %v846_v16 = vpack.c.bf16 %v220_v15, %v219_v14  ;;  %v849_v19 = vpack.c.bf16 %v222_v18, %v221_v17  ;;  %v223_v20 = vld [vmem:[#allocation6 + $0xb0] sm:$0xff]  ;;  %v224_v21 = vld [vmem:[#allocation6 + $0xb8] sm:$0xff]  ;;  %v225_v23 = vld [vmem:[#allocation6 + $0xc0] sm:$0xff] }
  0x3b   :  { %v852_v22 = vpack.c.bf16 %v224_v21, %v223_v20  ;;  %v226_v24 = vld [vmem:[#allocation6 + $0xc8] sm:$0xff]  ;;  %v227_v26 = vld [vmem:[#allocation6 + $0xd0] sm:$0xff]  ;;  %v228_v27 = vld [vmem:[#allocation6 + $0xd8] sm:$0xff] }
  0x3c   :  { %694 = vmatmul.mubr.msk.f32.vlgmr.msra.gmra.mrb[0].mxu1 %vm136_vm1, %v55_v11  ;;  %v855_v25 = vpack.c.bf16 %v226_v24, %v225_v23  ;;  %v858_v28 = vpack.c.bf16 %v228_v27, %v227_v26  ;;  %v229_v29 = vld [vmem:[#allocation6 + $0xe0] sm:$0xff]  ;;  %v230_v30 = vld [vmem:[#allocation6 + $0xe8] sm:$0xff]  ;;  %v231_v32 = vld [vmem:[#allocation6 + $0xf0] sm:$0xff] }
  0x3d   :  { %685 = vmatpush3.msra.mxu0 %v61_v10  ;;  %844 = vmatpush3.bf16.msra.mxu1 %v843_v12  ;;  %v861_v31 = vpack.c.bf16 %v230_v30, %v229_v29  ;;  %v232_v33 = vld [vmem:[#allocation6 + $0xf8] sm:$0xff]  ;;  %v309_v35 = vld [vmem:[#allocation6 + $0x100] sm:$0xff]  ;;  %v310_v36 = vld [vmem:[#allocation6 + $0x108] sm:$0xff]  ;;  %v235_v30 = vsub.s32 1, %v1113_v57 }
  0x3e   :  { %687 = vmatmul.mubr.msk.f32.vlgmr.msra.gmra.mrb[0].mxu0 %vm62_vm2, %v58_v13  ;;  %845 = vmatprep.subr.bf16.mxu1 %v1021_v0  ;;  %v864_v34 = vpack.c.bf16 %v232_v33, %v231_v32  ;;  %v311_v37 = vld [vmem:[#allocation6 + $0x110] sm:$0xff]  ;;  %v867_v38 = vpack.c.bf16 %v310_v36, %v309_v35  ;;  %v312_v39 = vld [vmem:[#allocation6 + $0x118] sm:$0xff]  ;;  %v313_v41 = vld [vmem:[#allocation6 + $0x120] sm:$0xff] }
  0x3f   :  { %728 = vmatprep.mubr.msk.f32.mxu1 %vm1022_vm0, %v1023_v1  ;;  %866 = vmatprep.subr.bf16.mxu0 %v1021_v0  ;;  %v870_v40 = vpack.c.bf16 %v312_v39, %v311_v37  ;;  %v314_v42 = vld [vmem:[#allocation6 + $0x128] sm:$0xff]  ;;  %v315_v44 = vld [vmem:[#allocation6 + $0x130] sm:$0xff]  ;;  %v316_v45 = vld [vmem:[#allocation6 + $0x138] sm:$0xff] }
  0x40   :  { %763 = vmatprep.mubr.msk.f32.mxu0 %vm1022_vm0, %v1023_v1  ;;  %868 = vmatpush3.bf16.msra.mxu0 %v867_v38  ;;  %v873_v43 = vpack.c.bf16 %v314_v42, %v313_v41  ;;  %v876_v46 = vpack.c.bf16 %v316_v45, %v315_v44  ;;  %v317_v47 = vld [vmem:[#allocation6 + $0x140] sm:$0xff]  ;;  %v318_v48 = vld [vmem:[#allocation6 + $0x148] sm:$0xff]  ;;  %v319_v50 = vld [vmem:[#allocation6 + $0x150] sm:$0xff] }
  0x41   :  { %847 = vmatpush3.bf16.msra.mxu1 %v846_v16  ;;  %869 = vmatprep.subr.bf16.mxu0 %v1021_v0  ;;  %v879_v49 = vpack.c.bf16 %v318_v48, %v317_v47  ;;  %v320_v51 = vld [vmem:[#allocation6 + $0x158] sm:$0xff]  ;;  %v321_v53 = vld [vmem:[#allocation6 + $0x160] sm:$0xff]  ;;  %v322_v54 = vld [vmem:[#allocation6 + $0x168] sm:$0xff] }
  0x42   :  { %848 = vmatprep.subr.bf16.mxu1 %v1021_v0  ;;  %v882_v52 = vpack.c.bf16 %v320_v51, %v319_v50  ;;  %v885_v55 = vpack.c.bf16 %v322_v54, %v321_v53  ;;  %v1119_v59 = vld [vmem:[%s1159_s3] sm:$0xff]  ;;  %v323_v6 = vld [vmem:[#allocation6 + $0x170] sm:$0xff]  ;;  %v324_v7 = vld [vmem:[#allocation6 + $0x178] sm:$0xff] }
  0x43   :  { %v213_v61 = vrot.slane %v1119_v59, %v212_v58  ;;  %v888_v8 = vpack.c.bf16 %v324_v7, %v323_v6  ;;  %v400_v9 = vld [vmem:[#allocation6 + $0x180] sm:$0xff]  ;;  %v401_v10 = vld [vmem:[#allocation6 + $0x188] sm:$0xff]  ;;  %v402_v11 = vld [vmem:[#allocation6 + $0x190] sm:$0xff]  ;;  %v418_v7 = vsub.s32 3, %v1113_v57 }
  0x44   :  { %871 = vmatpush3.bf16.msra.mxu0 %v870_v40  ;;  %v891_v12 = vpack.c.bf16 %v401_v10, %v400_v9  ;;  %v403_v13 = vld [vmem:[#allocation6 + $0x198] sm:$0xff]  ;;  %v404_v15 = vld [vmem:[#allocation6 + $0x1a0] sm:$0xff]  ;;  %v405_v16 = vld [vmem:[#allocation6 + $0x1a8] sm:$0xff] }
  0x45   :  { %850 = vmatpush3.bf16.msra.mxu1 %v849_v19  ;;  %872 = vmatprep.subr.bf16.mxu0 %v1021_v0  ;;  %v894_v14 = vpack.c.bf16 %v403_v13, %v402_v11  ;;  %v897_v17 = vpack.c.bf16 %v405_v16, %v404_v15  ;;  %v406_v18 = vld [vmem:[#allocation6 + $0x1b0] sm:$0xff]  ;;  %v407_v19 = vld [vmem:[#allocation6 + $0x1b8] sm:$0xff]  ;;  %v408_v21 = vld [vmem:[#allocation6 + $0x1c0] sm:$0xff] }
  0x46   :  { %851 = vmatprep.subr.bf16.mxu1 %v1021_v0  ;;  %v900_v20 = vpack.c.bf16 %v407_v19, %v406_v18  ;;  %v410_v24 = vld [vmem:[#allocation6 + $0x1d0] sm:$0xff]  ;;  %v412_v27 = vld [vmem:[#allocation6 + $0x1e0] sm:$0xff]  ;;  %v415_v37 = vld [vmem:[#allocation6 + $0x1f8] sm:$0xff] }
  0x47   :  { %v414_v36 = vld [vmem:[#allocation6 + $0x1f0] sm:$0xff]  ;;  %v492_v39 = vld [vmem:[#allocation6 + $0x200] sm:$0xff]  ;;  %v493_v40 = vld [vmem:[#allocation6 + $0x208] sm:$0xff] }
  0x48   :  { %874 = vmatpush3.bf16.msra.mxu0 %v873_v43  ;;  %v912_v38 = vpack.c.bf16 %v415_v37, %v414_v36  ;;  %v494_v41 = vld [vmem:[#allocation6 + $0x210] sm:$0xff]  ;;  %v915_v42 = vpack.c.bf16 %v493_v40, %v492_v39  ;;  %v495_v43 = vld [vmem:[#allocation6 + $0x218] sm:$0xff]  ;;  %v496_v45 = vld [vmem:[#allocation6 + $0x220] sm:$0xff] }
  0x49   :  { %853 = vmatpush3.bf16.msra.mxu1 %v852_v22  ;;  %875 = vmatprep.subr.bf16.mxu0 %v1021_v0  ;;  %v409_v22 = vld [vmem:[#allocation6 + $0x1c8] sm:$0xff]  ;;  %v918_v44 = vpack.c.bf16 %v495_v43, %v494_v41  ;;  %v499_v48 = vld [vmem:[#allocation6 + $0x238] sm:$0xff]  ;;  %v500_v50 = vld [vmem:[#allocation6 + $0x240] sm:$0xff] }
  0x4a   :  { %854 = vmatprep.subr.bf16.mxu1 %v1021_v0  ;;  %v903_v23 = vpack.c.bf16 %v409_v22, %v408_v21  ;;  %v501_v51 = vld [vmem:[#allocation6 + $0x248] sm:$0xff]  ;;  %v502_v53 = vld [vmem:[#allocation6 + $0x250] sm:$0xff]  ;;  %v503_v54 = vld [vmem:[#allocation6 + $0x258] sm:$0xff]  ;;  %v592_v21 = vsub.s32 5, %v1113_v57 }
  0x4b   :  { %v504_v56 = vld [vmem:[#allocation6 + $0x260] sm:$0xff]  ;;  %v505_v58 = vld [vmem:[#allocation6 + $0x268] sm:$0xff] }
  0x4c   :  { %877 = vmatpush3.bf16.msra.mxu0 %v876_v46  ;;  %v497_v46 = vld [vmem:[#allocation6 + $0x228] sm:$0xff]  ;;  %v593_v22 = vrot.slane %v1119_v59, %v592_v21 }
  0x4d   :  { %856 = vmatpush3.bf16.msra.mxu1 %v855_v25  ;;  %878 = vmatprep.subr.bf16.mxu0 %v1021_v0  ;;  %v411_v25 = vld [vmem:[#allocation6 + $0x1d8] sm:$0xff]  ;;  %v921_v47 = vpack.c.bf16 %v497_v46, %v496_v45 }
  0x4e   :  { %857 = vmatprep.subr.bf16.mxu1 %v1021_v0  ;;  %v906_v26 = vpack.c.bf16 %v411_v25, %v410_v24 }
  0x50   :  { %880 = vmatpush3.bf16.msra.mxu0 %v879_v49 }
  0x51   :  { %859 = vmatpush3.bf16.msra.mxu1 %v858_v28  ;;  %881 = vmatprep.subr.bf16.mxu0 %v1021_v0  ;;  %v413_v28 = vld [vmem:[#allocation6 + $0x1e8] sm:$0xff] }
  0x52   :  { %860 = vmatprep.subr.bf16.mxu1 %v1021_v0  ;;  %v909_v29 = vpack.c.bf16 %v413_v28, %v412_v27 }
  0x54   :  { %883 = vmatpush3.bf16.msra.mxu0 %v882_v52  ;;  %v927_v52 = vpack.c.bf16 %v501_v51, %v500_v50 }
  0x55   :  { %862 = vmatpush3.bf16.msra.mxu1 %v861_v31  ;;  %884 = vmatprep.subr.bf16.mxu0 %v1021_v0  ;;  %v236_v31 = vrot.slane %v1119_v59, %v235_v30 }
  0x56   :  { %863 = vmatprep.subr.bf16.mxu1 %v1021_v0 }
  0x58   :  { %886 = vmatpush3.bf16.msra.mxu0 %v885_v55  ;;  %v930_v55 = vpack.c.bf16 %v503_v54, %v502_v53 }
  0x59   :  { %865 = vmatpush3.bf16.msra.mxu1 %v864_v34  ;;  %887 = vmatprep.subr.bf16.mxu0 %v1021_v0 }
  0x5a   :  { %890 = vmatprep.subr.bf16.mxu1 %v1021_v0 }
  0x5c   :  { %889 = vmatpush3.bf16.msra.mxu0 %v888_v8  ;;  %v419_v8 = vrot.slane %v1119_v59, %v418_v7 }
  0x5d   :  { %914 = vmatprep.subr.bf16.mxu0 %v1021_v0 }
 0x10f   :  { %v206_v60 = vpop.f32.mrb[0].mxu1 }
 0x110   :  { %v695_v63 = vpop.f32.mrb[1].mxu1 }
 0x111   :  { %v132_v62 = vpop.f32.mrb[0].mxu0 }
 0x112   :  { %v207_v2 = vadd.f32 %v206_v60, %v132_v62  ;;  %v688_v3 = vpop.f32.mrb[1].mxu0  ;;  %v933_v60 = vpack.c.bf16 %v505_v58, %v504_v56 }
 0x114   :  { %v214_v4 = vadd.f32 %v213_v61, %v207_v2  ;;  %v327_v61 = vsub.s32 2, %v1113_v57 }
 0x116   :  { %v215_v5 = vmax.f32 %v214_v4, 0.0  ;;  %v328_v62 = vrot.slane %v1119_v59, %v327_v61  ;;  %v506_v4 = vld [vmem:[#allocation6 + $0x270] sm:$0xff] }
 0x118   :  { %729 = vmatmul.mubr.f32.vlgmr.msra.gmra.mrb[2].mxu1 %v215_v5  ;;  %v507_v5 = vld [vmem:[#allocation6 + $0x278] sm:$0xff] }
 0x119   :  { %798 = vmatprep.mubr.msk.f32.mxu1 %vm1022_vm0, %v1023_v1  ;;  %892 = vmatpush3.bf16.msra.mxu1 %v891_v12  ;;  %v936_v6 = vpack.c.bf16 %v507_v5, %v506_v4  ;;  %v510_v12 = vsub.s32 4, %v1113_v57 }
 0x11a   :  { %893 = vmatprep.subr.bf16.mxu1 %v1021_v0 }
 0x11b   :  { %v511_v13 = vrot.slane %v1119_v59, %v510_v12 }
 0x11d   :  { %895 = vmatpush3.bf16.msra.mxu1 %v894_v14  ;;  %v585_v14 = vsub.s32 6, %v1113_v57 }
 0x11e   :  { %896 = vmatprep.subr.bf16.mxu1 %v1021_v0 }
 0x11f   :  { %v586_v18 = vrot.slane %v1119_v59, %v585_v14 }
 0x121   :  { %898 = vmatpush3.bf16.msra.mxu1 %v897_v17 }
 0x122   :  { %899 = vmatprep.subr.bf16.mxu1 %v1021_v0 }
 0x125   :  { %901 = vmatpush3.bf16.msra.mxu1 %v900_v20 }
 0x126   :  { %902 = vmatprep.subr.bf16.mxu1 %v1021_v0 }
 0x129   :  { %904 = vmatpush3.bf16.msra.mxu1 %v903_v23 }
 0x12a   :  { %905 = vmatprep.subr.bf16.mxu1 %v1021_v0 }
 0x12d   :  { %907 = vmatpush3.bf16.msra.mxu1 %v906_v26 }
 0x12e   :  { %908 = vmatprep.subr.bf16.mxu1 %v1021_v0 }
 0x131   :  { %910 = vmatpush3.bf16.msra.mxu1 %v909_v29 }
 0x132   :  { %911 = vmatprep.subr.bf16.mxu1 %v1021_v0 }
 0x135   :  { %913 = vmatpush3.bf16.msra.mxu1 %v912_v38 }
 0x1eb   :  { %v303_v32 = vpop.f32.mrb[2].mxu1 }
 0x1ec   :  { %v304_v33 = vadd.f32 %v303_v32, %v236_v31  ;;  %v730_v34 = vpop.f32.mrb[3].mxu1 }
 0x1ee   :  { %v307_v35 = vmax.f32 %v304_v33, 0.0 }
 0x1f0   :  { %764 = vmatmul.mubr.f32.vlgmr.msra.gmra.mrb[2].mxu0 %v307_v35 }
 0x1f1   :  { %833 = vmatprep.mubr.msk.f32.mxu0 %vm1022_vm0, %v1023_v1  ;;  %916 = vmatpush3.bf16.msra.mxu0 %v915_v42  ;;  %v498_v1 = vld [vmem:[#allocation6 + $0x230] sm:$0xff] }
 0x1f2   :  { %917 = vmatprep.subr.bf16.mxu0 %v1021_v0  ;;  %v924_v49 = vpack.c.bf16 %v499_v48, %v498_v1 }
 0x1f5   :  { %919 = vmatpush3.bf16.msra.mxu0 %v918_v44 }
 0x1f6   :  { %920 = vmatprep.subr.bf16.mxu0 %v1021_v0 }
 0x1f9   :  { %922 = vmatpush3.bf16.msra.mxu0 %v921_v47 }
 0x1fa   :  { %923 = vmatprep.subr.bf16.mxu0 %v1021_v0 }
 0x1fd   :  { %925 = vmatpush3.bf16.msra.mxu0 %v924_v49 }
 0x1fe   :  { %926 = vmatprep.subr.bf16.mxu0 %v1021_v0 }
 0x201   :  { %928 = vmatpush3.bf16.msra.mxu0 %v927_v52 }
 0x202   :  { %929 = vmatprep.subr.bf16.mxu0 %v1021_v0 }
 0x205   :  { %931 = vmatpush3.bf16.msra.mxu0 %v930_v55 }
 0x206   :  { %932 = vmatprep.subr.bf16.mxu0 %v1021_v0 }
 0x209   :  { %934 = vmatpush3.bf16.msra.mxu0 %v933_v60 }
 0x20a   :  { %935 = vmatprep.subr.bf16.mxu0 %v1021_v0 }
 0x20d   :  { %937 = vmatpush3.bf16.msra.mxu0 %v936_v6 }
 0x2c3   :  { %v395_v63 = vpop.f32.mrb[2].mxu0 }
 0x2c4   :  { %v396_v2 = vadd.f32 %v395_v63, %v328_v62  ;;  %v765_v3 = vpop.f32.mrb[3].mxu0 }
 0x2c6   :  { %799 = vmatmul.mubr.f32.vlgmr.msra.gmra.mrb[4].mxu1 %v396_v2 }
 0x399   :  { %v486_v9 = vpop.f32.mrb[4].mxu1 }
 0x39a   :  { %v487_v10 = vadd.f32 %v486_v9, %v419_v8  ;;  %v800_v11 = vpop.f32.mrb[5].mxu1 }
 0x39c   :  { %v490_v0 = vmax.f32 %v487_v10, 0.0 }
 0x39e   :  { %834 = vmatmul.mubr.f32.vlgmr.msra.gmra.mrb[4].mxu0 %v490_v0 }
 0x471   :  { %v578_v15 = vpop.f32.mrb[4].mxu0 }
 0x472   :  { %v579_v16 = vadd.f32 %v578_v15, %v511_v13  ;;  %v835_v17 = vpop.f32.mrb[5].mxu0 }
 0x474   :  { %v582_v19 = vmax.f32 %v579_v16, 0.0 }
 0x476   :  { %v587_v20 = vmul.f32 %v586_v18, %v582_v19 }
 0x478   :  { %588 = vadd.xlane.f32.xlu0 %v587_v20 }
 0x505   :  { %v589_v23 = vpop.xlane.xlu0 %588 }
 0x506   :  { %v594_v24 = vadd.f32 %v593_v22, %v589_v23 }
 0x508   :  { %596 = vst.msk [vmem:[%s1160_s4] sm:$0xff] %vm595_vm3, %v594_v24 }
 0x509   :  { %601 = vsyncpa [#allocation3], 1 }
 0x50a   :  { %602 = vsyncpa [#allocation5], 1 }

</bundles_post_ra>
